<compile_context>
chip_gen: v7x
topology: tpu7x:2x2x1
jax: 0.10.0
libtpu: 0.0.40
codegen_flags: <defaults>
</compile_context>

<pallas_src>
import math

import jax
import jax.numpy as jnp
from jax.experimental import pallas as pl
from jax.experimental.pallas import tpu as pltpu

_LANES = 128


def _relu_transform_kernel(bnd_ref, bo_ref, lmbda_ref, beta_ref, mu_ref):
    l = bnd_ref[0]                      # (TM, 128) lower
    u = bnd_ref[1]                      # (TM, 128) upper

    zero = jnp.zeros_like(l)
    one = jnp.ones_like(l)

    ind2 = l >= 0.0
    ind3 = jnp.logical_and(u > 0.0, l < 0.0)
    ind4 = jnp.logical_and(u > -l, ind3)
    keep_l = jnp.logical_or(ind2, ind4)

    # Output bounds (single stacked (2, TM, 128) block).
    bo_ref[0] = jnp.where(keep_l, l, zero)
    bo_ref[1] = jnp.where(jnp.logical_or(ind2, ind3), u, zero)

    # Relaxation coefficients (module state; emitted as extra outputs).
    # ind3 guarantees u - l > 0, so the guarded reciprocal is safe.
    diff_safe = jnp.where(ind3, u - l, one)
    inv_diff = pl.reciprocal(diff_safe, approx=False)
    lam_unstable = u * inv_diff
    lmbda_ref[...] = jnp.where(ind2, one, jnp.where(ind3, lam_unstable, zero))
    beta_ref[...] = jnp.where(keep_l, one, zero)
    mu_ref[...] = jnp.where(ind3, (-l) * lam_unstable, zero)


def _pick_block_rows(sublanes):
    """Per-generation row tile: as large as the scoped-VMEM budget allows."""
    try:
        vmem = int(pltpu.get_tpu_info().vmem_capacity_bytes)
    except Exception:  # not on TPU / API unavailable -> conservative default
        vmem = 64 << 20
    # 7 (rows, 128) f32 slabs (2 in + 5 out) live per step, double-buffered.
    budget = min(vmem // 3, 32 << 20)
    rows = budget // (7 * 2 * 4 * _LANES)
    rows = max(1024, min(4096, rows))
    return (rows // sublanes) * sublanes


def _reference(bounds):
    """Pure-JAX reference mirroring the PyTorch forward exactly."""
    l, u = bounds[0], bounds[1]
    ind2 = l >= 0
    ind3 = (u > 0) & (l < 0)
    ind4 = (u > -l) & ind3
    zero = jnp.zeros_like(l)
    one = jnp.ones_like(l)
    lower_out = jnp.where(ind2 | ind4, l, zero)
    upper_out = jnp.where(ind2 | ind3, u, zero)
    diff = jnp.where(ind3, u - l, one)
    lmbda = jnp.where(ind2, one, jnp.where(ind3, u / diff, zero))
    beta = jnp.where(ind2 | ind4, one, zero)
    mu = jnp.where(ind3, (-l) * u / diff, zero)
    return jnp.stack([lower_out, upper_out], 0), lmbda, beta, mu


def relu_transformer_forward(bounds, block_rows=None, pallas_min_elems=65536):
    """Pallas implementation of ReLUTransformer.forward (last=None case).

    bounds: jnp array of shape [2, *dims], bounds[0]=lower, bounds[1]=upper.
    Returns (bounds_out, lmbda, beta, mu) with bounds_out.shape == bounds.shape
    and lmbda/beta/mu shaped like bounds[1].
    """
    orig_shape = bounds.shape
    assert orig_shape[0] == 2
    elem_shape = orig_shape[1:]
    n = math.prod(elem_shape)
    dt = bounds.dtype

    # Latency regime: below the threshold a fused XLA elementwise pass beats a
    # kernel launch + pad/trim plumbing.
    if n < pallas_min_elems:
        return _reference(bounds)

    itemsize = jnp.dtype(dt).itemsize
    sub = max(8, 32 // max(1, itemsize))          # sublane tile for this dtype

    # Sublane-dense layout: (R, 128) rows, R padded to a multiple of the row
    # tile. Pad values are zeros -> they fall in the ind2 branch and are
    # trimmed away afterwards, so they never affect real outputs.
    r_raw = pl.cdiv(n, _LANES)
    if block_rows is None:
        block_rows = _pick_block_rows(sub)
    tm = min(block_rows, ((r_raw + sub - 1) // sub) * sub)
    r = ((r_raw + tm - 1) // tm) * tm
    n_pad = r * _LANES

    flat = bounds.reshape(2, n)
    if n_pad != n:
        flat = jnp.pad(flat, ((0, 0), (0, n_pad - n)))
    slab = flat.reshape(2, r, _LANES)             # metadata-only when no pad

    grid = (r // tm,)
    bnd_spec = pl.BlockSpec((2, tm, _LANES), lambda i: (0, i, 0))
    vec_spec = pl.BlockSpec((tm, _LANES), lambda i: (i, 0))

    # Resident footprint: 7 slabs (2 in + 5 out) x 2 buffers x tm x 128 x item.
    footprint = 7 * 2 * tm * _LANES * itemsize
    vmem_limit = int(min(max(2 * footprint, 32 << 20), 56 << 20))

    bounds_out, lmbda, beta, mu = pl.pallas_call(
        _relu_transform_kernel,
        out_shape=(
            jax.ShapeDtypeStruct((2, r, _LANES), dt),
            jax.ShapeDtypeStruct((r, _LANES), dt),
            jax.ShapeDtypeStruct((r, _LANES), dt),
            jax.ShapeDtypeStruct((r, _LANES), dt),
        ),
        grid=grid,
        in_specs=[bnd_spec],
        out_specs=(bnd_spec, vec_spec, vec_spec, vec_spec),
        compiler_params=pltpu.CompilerParams(
            dimension_semantics=("parallel",),
            vmem_limit_bytes=vmem_limit),
    )(slab)

    if n_pad == n:
        bounds_out = bounds_out.reshape(orig_shape)
        lmbda = lmbda.reshape(elem_shape)
        beta = beta.reshape(elem_shape)
        mu = mu.reshape(elem_shape)
    else:
        bounds_out = bounds_out.reshape(2, n_pad)[:, :n].reshape(orig_shape)
        lmbda = lmbda.reshape(n_pad)[:n].reshape(elem_shape)
        beta = beta.reshape(n_pad)[:n].reshape(elem_shape)
        mu = mu.reshape(n_pad)[:n].reshape(elem_shape)

    # TODO(synk): back_sub()/_back_sub() path (beta.ndim == 2 with a chained
    # `last` layer) is not implemented here since last=None (module default).
    return bounds_out, lmbda, beta, mu


def _check(bounds, **kwargs):
    bounds_out, lmbda, beta, mu = relu_transformer_forward(bounds, **kwargs)
    jax.block_until_ready(bounds_out)
    ref_bounds, ref_lmbda, ref_beta, ref_mu = _reference(bounds)
    return (
        bounds_out.shape == bounds.shape
        and jnp.allclose(bounds_out, ref_bounds, atol=1e-6)
        and jnp.allclose(lmbda, ref_lmbda, atol=1e-6)
        and jnp.allclose(beta, ref_beta, atol=1e-6)
        and jnp.allclose(mu, ref_mu, atol=1e-6)
    )


if __name__ == "__main__":
    key = jax.random.PRNGKey(0)
    k1, k2, k3, k4, k5, k6 = jax.random.split(key, 6)

    # bounds for a small conv-like activation: [2, C=4, H=16, W=16]
    lower = jax.random.normal(k1, (4, 16, 16), dtype=jnp.float32)
    upper = lower + jnp.abs(jax.random.normal(k2, (4, 16, 16), dtype=jnp.float32))
    bounds = jnp.stack([lower, upper], axis=0)           # [2, 4, 16, 16]
    ok_main = _check(bounds, pallas_min_elems=0)         # force the Pallas path

    # ragged shape (105 elems, not a multiple of 128) exercises pad/trim
    lower2 = jax.random.normal(k3, (3, 7, 5), dtype=jnp.float32)
    upper2 = lower2 + jnp.abs(jax.random.normal(k4, (3, 7, 5), dtype=jnp.float32))
    bounds2 = jnp.stack([lower2, upper2], axis=0)        # [2, 3, 7, 5]
    ok_ragged = _check(bounds2, pallas_min_elems=0)

    # multi-step grid: [2, 16, 32, 32] with a deliberately small row tile
    lower3 = jax.random.normal(k5, (16, 32, 32), dtype=jnp.float32)
    upper3 = lower3 + jnp.abs(jax.random.normal(k6, (16, 32, 32), dtype=jnp.float32))
    bounds3 = jnp.stack([lower3, upper3], axis=0)        # [2, 16, 32, 32]
    ok_grid = _check(bounds3, block_rows=64, pallas_min_elems=0)

    if bool(ok_main) and bool(ok_ragged) and bool(ok_grid):
        print("KERNEL_OK")
    else:
        raise SystemExit("mismatch vs reference")
</pallas_src>

<mosaic_0001>
module attributes {stable_mosaic.version = 11 : i64} {
  func.func @_relu_transform_kernel(%arg0: i32, %arg1: memref<2x8x128xf32, #tpu.memory_space<vmem>>, %arg2: memref<2x8x128xf32, #tpu.memory_space<vmem>>, %arg3: memref<8x128xf32, #tpu.memory_space<vmem>>, %arg4: memref<8x128xf32, #tpu.memory_space<vmem>>, %arg5: memref<8x128xf32, #tpu.memory_space<vmem>>) attributes {dimension_semantics = [#tpu.dimension_semantics<parallel>], iteration_bounds = array<i64: 1>, scalar_prefetch = 0 : i64, scratch_operands = 0 : i64, tpu.core_type = #tpu.core_type<tc>, window_params = [{transform_indices = @transform_0, window_bounds = array<i64: 2, 8, 128>}, {transform_indices = @transform_1, window_bounds = array<i64: 2, 8, 128>}, {transform_indices = @transform_2, window_bounds = array<i64: 8, 128>}, {transform_indices = @transform_3, window_bounds = array<i64: 8, 128>}, {transform_indices = @transform_4, window_bounds = array<i64: 8, 128>}]} {
    %c0 = arith.constant 0 : index
    %c0_0 = arith.constant 0 : index
    %c0_1 = arith.constant 0 : index
    %0 = vector.load %arg1[%c0, %c0_0, %c0_1] : memref<2x8x128xf32, #tpu.memory_space<vmem>>, vector<1x8x128xf32>
    %1 = vector.shape_cast %0 : vector<1x8x128xf32> to vector<8x128xf32>
    %c1 = arith.constant 1 : index
    %c0_2 = arith.constant 0 : index
    %c0_3 = arith.constant 0 : index
    %2 = vector.load %arg1[%c1, %c0_2, %c0_3] : memref<2x8x128xf32, #tpu.memory_space<vmem>>, vector<1x8x128xf32>
    %3 = vector.shape_cast %2 : vector<1x8x128xf32> to vector<8x128xf32>
    %cst = arith.constant 0.000000e+00 : f32
    %4 = vector.broadcast %cst : f32 to vector<8x128xf32>
    %cst_4 = arith.constant 1.000000e+00 : f32
    %5 = vector.broadcast %cst_4 : f32 to vector<8x128xf32>
    %cst_5 = arith.constant 0.000000e+00 : f32
    %6 = vector.broadcast %cst_5 : f32 to vector<8x128xf32>
    %7 = arith.cmpf oge, %1, %6 : vector<8x128xf32>
    %cst_6 = arith.constant 0.000000e+00 : f32
    %8 = vector.broadcast %cst_6 : f32 to vector<8x128xf32>
    %9 = arith.cmpf ogt, %3, %8 : vector<8x128xf32>
    %cst_7 = arith.constant 0.000000e+00 : f32
    %10 = vector.broadcast %cst_7 : f32 to vector<8x128xf32>
    %11 = arith.cmpf olt, %1, %10 : vector<8x128xf32>
    %12 = arith.andi %9, %11 : vector<8x128xi1>
    %cst_8 = arith.constant 0.000000e+00 : f32
    %13 = vector.broadcast %cst_8 : f32 to vector<8x128xf32>
    %14 = arith.subf %13, %1 : vector<8x128xf32>
    %15 = arith.cmpf ogt, %3, %14 : vector<8x128xf32>
    %16 = arith.andi %15, %12 : vector<8x128xi1>
    %17 = arith.ori %7, %16 : vector<8x128xi1>
    %18 = arith.select %17, %1, %4 : vector<8x128xi1>, vector<8x128xf32>
    %c0_9 = arith.constant 0 : index
    %c0_10 = arith.constant 0 : index
    %c0_11 = arith.constant 0 : index
    %19 = vector.load %arg2[%c0_9, %c0_10, %c0_11] : memref<2x8x128xf32, #tpu.memory_space<vmem>>, vector<1x8x128xf32>
    %20 = vector.shape_cast %19 : vector<1x8x128xf32> to vector<8x128xf32>
    %21 = vector.shape_cast %18 : vector<8x128xf32> to vector<1x8x128xf32>
    tpu.vector_store %arg2[%c0_9, %c0_10, %c0_11], %21 {strides = array<i32>} : memref<2x8x128xf32, #tpu.memory_space<vmem>>, vector<1x8x128xf32>,
    %22 = arith.ori %7, %12 : vector<8x128xi1>
    %23 = arith.select %22, %3, %4 : vector<8x128xi1>, vector<8x128xf32>
    %c1_12 = arith.constant 1 : index
    %c0_13 = arith.constant 0 : index
    %c0_14 = arith.constant 0 : index
    %24 = vector.load %arg2[%c1_12, %c0_13, %c0_14] : memref<2x8x128xf32, #tpu.memory_space<vmem>>, vector<1x8x128xf32>
    %25 = vector.shape_cast %24 : vector<1x8x128xf32> to vector<8x128xf32>
    %26 = vector.shape_cast %23 : vector<8x128xf32> to vector<1x8x128xf32>
    tpu.vector_store %arg2[%c1_12, %c0_13, %c0_14], %26 {strides = array<i32>} : memref<2x8x128xf32, #tpu.memory_space<vmem>>, vector<1x8x128xf32>,
    %27 = arith.subf %3, %1 : vector<8x128xf32>
    %28 = arith.select %12, %27, %5 : vector<8x128xi1>, vector<8x128xf32>
    %29 = tpu.reciprocal %28 : vector<8x128xf32> -> vector<8x128xf32>
    %30 = arith.mulf %3, %29 : vector<8x128xf32>
    %31 = arith.select %12, %30, %4 : vector<8x128xi1>, vector<8x128xf32>
    %32 = arith.select %7, %5, %31 : vector<8x128xi1>, vector<8x128xf32>
    %c0_15 = arith.constant 0 : index
    %c0_16 = arith.constant 0 : index
    %33 = vector.load %arg3[%c0_15, %c0_16] : memref<8x128xf32, #tpu.memory_space<vmem>>, vector<8x128xf32>
    tpu.vector_store %arg3[%c0_15, %c0_16], %32 {strides = array<i32>} : memref<8x128xf32, #tpu.memory_space<vmem>>, vector<8x128xf32>,
    %34 = arith.select %17, %5, %4 : vector<8x128xi1>, vector<8x128xf32>
    %c0_17 = arith.constant 0 : index
    %c0_18 = arith.constant 0 : index
    %35 = vector.load %arg4[%c0_17, %c0_18] : memref<8x128xf32, #tpu.memory_space<vmem>>, vector<8x128xf32>
    tpu.vector_store %arg4[%c0_17, %c0_18], %34 {strides = array<i32>} : memref<8x128xf32, #tpu.memory_space<vmem>>, vector<8x128xf32>,
    %cst_19 = arith.constant 0.000000e+00 : f32
    %36 = vector.broadcast %cst_19 : f32 to vector<8x128xf32>
    %37 = arith.subf %36, %1 : vector<8x128xf32>
    %38 = arith.mulf %37, %30 : vector<8x128xf32>
    %39 = arith.select %12, %38, %4 : vector<8x128xi1>, vector<8x128xf32>
    %c0_20 = arith.constant 0 : index
    %c0_21 = arith.constant 0 : index
    %40 = vector.load %arg5[%c0_20, %c0_21] : memref<8x128xf32, #tpu.memory_space<vmem>>, vector<8x128xf32>
    tpu.vector_store %arg5[%c0_20, %c0_21], %39 {strides = array<i32>} : memref<8x128xf32, #tpu.memory_space<vmem>>, vector<8x128xf32>,
    return
  }
  func.func @transform_0(%arg0: i32) -> (i32, i32, i32) {
    %c0_i32 = arith.constant 0 : i32
    %c0_i32_0 = arith.constant 0 : i32
    %c0_i32_1 = arith.constant 0 : i32
    return %c0_i32, %arg0, %c0_i32_0 : i32, i32, i32
  }
  func.func @transform_1(%arg0: i32) -> (i32, i32, i32) {
    %c0_i32 = arith.constant 0 : i32
    %c0_i32_0 = arith.constant 0 : i32
    %c0_i32_1 = arith.constant 0 : i32
    return %c0_i32, %arg0, %c0_i32_0 : i32, i32, i32
  }
  func.func @transform_2(%arg0: i32) -> (i32, i32) {
    %c0_i32 = arith.constant 0 : i32
    %c0_i32_0 = arith.constant 0 : i32
    return %arg0, %c0_i32 : i32, i32
  }
  func.func @transform_3(%arg0: i32) -> (i32, i32) {
    %c0_i32 = arith.constant 0 : i32
    %c0_i32_0 = arith.constant 0 : i32
    return %arg0, %c0_i32 : i32, i32
  }
  func.func @transform_4(%arg0: i32) -> (i32, i32) {
    %c0_i32 = arith.constant 0 : i32
    %c0_i32_0 = arith.constant 0 : i32
    return %arg0, %c0_i32 : i32, i32
  }
}

</mosaic_0001>

<bundles_post_ra>
// kernel: tpu_custom_call.1
= control target key start
LH: loop header
LB: loop body
LE: loop exit
PB: predicated region body
PF: predicated region fallthrough
CT: control target
= control target key end

     0   :  { %10 = vsyncpa [#allocation3], 0  ;;  %s374_s0 = inlined_call_operand.hbm [shape: f32[2,8,128], index: 0, kind: input, shape index: {}]   ;;  %s375_s1 = inlined_call_operand.hbm [shape: f32[2,8,128], index: 1, kind: output, shape index: {0}]   ;;  %s376_s2 = inlined_call_operand.hbm [shape: f32[8,128], index: 2, kind: output, shape index: {1}]   ;;  %s377_s3 = inlined_call_operand.hbm [shape: f32[8,128], index: 3, kind: output, shape index: {2}]   ;;  %s378_s4 = inlined_call_operand.hbm [shape: f32[8,128], index: 4, kind: output, shape index: {3}]  }
   0x1   :  { %11 = vsyncpa [#allocation4], 0 }
   0x2   :  { %12 = vsyncpa [#allocation7], 0 }
   0x3   :  { %13 = vsyncpa [#allocation10], 0  ;;  %s244_s15 = smov [#allocation2]   ;;  %s126_s19 = scalar_lea.hbm %s374_s0, 256 }
   0x4   :  { %s19_s16 = sshll.u32 %s244_s15, 4  ;;  %p127_p0 = scmp.ne.s32.totalorder %s374_s0, %s126_s19  ;;  %s20_s16 = int_to_ptr.vmem [resolvable:$true] %s19_s16 }
   0x5   :  { %p130_p1 = scmp.lt.u32.totalorder %s126_s19, %s374_s0 }
   0x7   :  { %p132_p2 = pnand %p130_p1, %p127_p0 }
   0x9   :  { %135 = shalt.err (!%p132_p2)
}
   0xa   :  { %s136_s24 = scalar_lea.vmem %s20_s16, 256  ;;  %p141_p4 = scmp.lt.s32.totalorder %s20_s16, %s20_s16 }
   0xb   :  { %p137_p3 = scmp.ne.s32.totalorder %s20_s16, %s136_s24  ;;  %p142_p5 = scmp.lt.s32.totalorder %s136_s24, %s136_s24 }
   0xd   :  { %p143_p6 = por %p142_p5, %p141_p4 }
   0xf   :  { %p144_p7 = pnand %p143_p6, %p137_p3 }
  0x11   :  { %147 = shalt.err (!%p144_p7)
}
  0x12   :  { %s245_s25 = smov 128   ;;  %s246_s26 = smov 8  }
  0x13   :  { %25 = dma.hbm_to_vmem [thread:$0]  %s374_s0, 256, %s20_s16, [#allocation3], %s245_s25, %s245_s25, %s246_s26  }
  0x14   :  { %236 = dma.done.wait [#allocation3], 256  }
  0x15   :  { %237 = vsyncadd [#allocation3], 4294967040  ;;  %v29_v0 = vld [vmem:[#allocation2] sm:$0xff]  ;;  %v31_v1 = vld [vmem:[#allocation2 + $0x8] sm:$0xff]  ;;  %s247_s0 = smov [#allocation5]   ;;  %v248_v8 = vmov 0.0  }
  0x16   :  { %vm32_vm0 = vcmp.ge.f32.partialorder %v29_v0, 0.0  ;;  %vm33_vm1 = vcmp.gt.f32.partialorder %v31_v1, 0.0  ;;  %vm34_vm2 = vcmp.lt.f32.partialorder %v29_v0, 0.0  ;;  %v46_v2 = vsub.f32 %v31_v1, %v29_v0  ;;  %s63_s29 = sshll.u32 %s247_s0, 4  ;;  %s64_s29 = int_to_ptr.vmem [resolvable:$true] %s63_s29 }
  0x17   :  { %vm292_vm3 = vmand %vm33_vm1, %vm34_vm2  ;;  %v36_v4 = vsub.f32 0.0, %v29_v0  ;;  %s148_s30 = scalar_lea.vmem %s64_s29, 256  ;;  %p153_p9 = scmp.lt.s32.totalorder %s64_s29, %s64_s29 }
  0x18   :  { %v47_v5 = vsel %vm292_vm3, %v46_v2, 1.0  ;;  %vm42_vm4 = vmor %vm32_vm0, %vm292_vm3  ;;  %p149_p8 = scmp.ne.s32.totalorder %s64_s29, %s148_s30  ;;  %p154_p10 = scmp.lt.s32.totalorder %s148_s30, %s148_s30 }
  0x19   :  { %124 = vrcp.f32 %v47_v5  ;;  %vm37_vm5 = vcmp.gt.f32.partialorder %v31_v1, %v36_v4  ;;  %v43_v6 = vsel %vm42_vm4, %v31_v1, 0.0 }
  0x1a   :  { %vm38_vm6 = vmand %vm37_vm5, %vm292_vm3  ;;  %45 = vst [vmem:[#allocation5 + $0x8] sm:$0xff] %v43_v6  ;;  %p155_p11 = por %p154_p10, %p153_p9 }
  0x1b   :  { %vm39_vm7 = vmor %vm32_vm0, %vm38_vm6 }
  0x1c   :  { %v40_v7 = vsel %vm39_vm7, %v29_v0, 0.0  ;;  %v53_v9 = vsel %vm39_vm7, 1.0, %v248_v8  ;;  %p156_p12 = pnand %p155_p11, %p149_p8 }
  0x1d   :  { %41 = vst [vmem:[#allocation5] sm:$0xff] %v40_v7  ;;  %54 = vst [vmem:[#allocation8] sm:$0xff] %v53_v9 }
  0x1e   :  { %159 = shalt.err (!%p156_p12)
}
  0x1f   :  { %s160_s7 = scalar_lea.hbm %s375_s1, 256 }
  0x20   :  { %p161_p13 = scmp.ne.s32.totalorder %s375_s1, %s160_s7  ;;  %p164_p0 = scmp.lt.u32.totalorder %s160_s7, %s375_s1 }
  0x22   :  { %p166_p1 = pnand %p164_p0, %p161_p13 }
  0x24   :  { %169 = shalt.err (!%p166_p1)
}
  0x25   :  { %69 = dma.vmem_to_hbm [thread:$0]  %s64_s29, 256, %s375_s1, [#allocation4], %s245_s25, %s245_s25, %s246_s26   ;;  %v125_v10 = vpop.eup %124 }
  0x26   :  { %s249_s14 = smov [#allocation6]   ;;  %v49_v11 = vmul.f32 %v125_v10, %v31_v1  ;;  %s250_s16 = smov [#allocation8]  }
  0x27   :  { %s76_s15 = sshll.u32 %s249_s14, 4  ;;  %s86_s17 = sshll.u32 %s250_s16, 4  ;;  %s77_s15 = int_to_ptr.vmem [resolvable:$true] %s76_s15  ;;  %s322_s17 = int_to_ptr.vmem [resolvable:$true] %s86_s17 }
  0x28   :  { %s251_s18 = smov [#allocation9]   ;;  %v50_v12 = vsel %vm292_vm3, %v49_v11, 0.0  ;;  %v55_v13 = vmul.f32 %v49_v11, %v36_v4  ;;  %s170_s1 = scalar_lea.vmem %s77_s15, 128 }
  0x29   :  { %s96_s19 = sshll.u32 %s251_s18, 4  ;;  %v51_v14 = vsel %vm32_vm0, 1.0, %v50_v12  ;;  %p171_p2 = scmp.ne.s32.totalorder %s77_s15, %s170_s1  ;;  %s326_s19 = int_to_ptr.vmem [resolvable:$true] %s96_s19 }
  0x2a   :  { %52 = vst [vmem:[#allocation6] sm:$0xff] %v51_v14  ;;  %v56_v15 = vsel %vm292_vm3, %v55_v13, 0.0  ;;  %p175_p3 = scmp.lt.s32.totalorder %s77_s15, %s77_s15  ;;  %p176_p4 = scmp.lt.s32.totalorder %s170_s1, %s170_s1 }
  0x2b   :  { %57 = vst [vmem:[#allocation9] sm:$0xff] %v56_v15 }
  0x2c   :  { %p177_p5 = por %p176_p4, %p175_p3 }
  0x2e   :  { %p178_p6 = pnand %p177_p5, %p171_p2 }
  0x30   :  { %181 = shalt.err (!%p178_p6)
}
  0x31   :  { %s182_s22 = scalar_lea.hbm %s376_s2, 128 }
  0x32   :  { %p183_p7 = scmp.ne.s32.totalorder %s376_s2, %s182_s22  ;;  %p186_p8 = scmp.lt.u32.totalorder %s182_s22, %s376_s2 }
  0x34   :  { %p188_p9 = pnand %p186_p8, %p183_p7 }
  0x36   :  { %191 = shalt.err (!%p188_p9)
}
  0x37   :  { %79 = dma.vmem_to_hbm [thread:$0]  %s77_s15, 128, %s376_s2, [#allocation7]  }
  0x38   :  { %s192_s0 = scalar_lea.vmem %s322_s17, 128  ;;  %p197_p11 = scmp.lt.s32.totalorder %s322_s17, %s322_s17 }
  0x39   :  { %p193_p10 = scmp.ne.s32.totalorder %s322_s17, %s192_s0  ;;  %p198_p12 = scmp.lt.s32.totalorder %s192_s0, %s192_s0 }
  0x3b   :  { %p199_p13 = por %p198_p12, %p197_p11 }
  0x3d   :  { %p200_p0 = pnand %p199_p13, %p193_p10 }
  0x3f   :  { %203 = shalt.err (!%p200_p0)
}
  0x40   :  { %s204_s5 = scalar_lea.hbm %s377_s3, 128 }
  0x41   :  { %p205_p1 = scmp.ne.s32.totalorder %s377_s3, %s204_s5  ;;  %p208_p2 = scmp.lt.u32.totalorder %s204_s5, %s377_s3 }
  0x43   :  { %p210_p3 = pnand %p208_p2, %p205_p1 }
  0x45   :  { %213 = shalt.err (!%p210_p3)
}
  0x46   :  { %89 = dma.vmem_to_hbm [thread:$0]  %s322_s17, 128, %s377_s3, [#allocation7]  }
  0x47   :  { %s214_s11 = scalar_lea.vmem %s326_s19, 128  ;;  %p219_p5 = scmp.lt.s32.totalorder %s326_s19, %s326_s19 }
  0x48   :  { %p215_p4 = scmp.ne.s32.totalorder %s326_s19, %s214_s11  ;;  %p220_p6 = scmp.lt.s32.totalorder %s214_s11, %s214_s11 }
  0x4a   :  { %p221_p7 = por %p220_p6, %p219_p5 }
  0x4c   :  { %p222_p8 = pnand %p221_p7, %p215_p4 }
  0x4e   :  { %225 = shalt.err (!%p222_p8)
}
  0x4f   :  { %s226_s14 = scalar_lea.hbm %s378_s4, 128 }
  0x50   :  { %p227_p9 = scmp.ne.s32.totalorder %s378_s4, %s226_s14  ;;  %p230_p10 = scmp.lt.u32.totalorder %s226_s14, %s378_s4 }
  0x52   :  { %p232_p11 = pnand %p230_p10, %p227_p9 }
  0x54   :  { %235 = shalt.err (!%p232_p11)
}
  0x55   :  { %99 = dma.vmem_to_hbm [thread:$0]  %s326_s19, 128, %s378_s4, [#allocation10]  }
  0x56   :  { %238 = dma.done.wait [#allocation4], 256  }
  0x57   :  { %239 = vsyncadd [#allocation4], 4294967040 }
  0x58   :  { %240 = dma.done.wait [#allocation7], 256  }
  0x59   :  { %241 = vsyncadd [#allocation7], 4294967040 }
  0x5a   :  { %242 = dma.done.wait [#allocation10], 128  }
  0x5b   :  { %243 = vsyncadd [#allocation10], 4294967168 }
  0x5c   :  { %112 = vsyncpa [#allocation3], 1 }
  0x5d   :  { %113 = vsyncpa [#allocation4], 1 }
  0x5e   :  { %114 = vsyncpa [#allocation7], 1 }
  0x5f   :  { %115 = vsyncpa [#allocation10], 1 }

</bundles_post_ra>
